<compile_context>
chip_gen: v6e
topology: v6e:2x2x1
jax: 0.10.0
libtpu: 0.0.40
codegen_flags: <defaults>
</compile_context>

<pallas_src>
import functools

import jax
import jax.numpy as jnp
from jax.experimental import pallas as pl
from jax.experimental.pallas import tpu as pltpu


def _criterion_kernel(a_ref, p_ref, n_ref, d_ref, out_ref, acc_ref,
                      *, batch, tile_b, steps_per_shard, need_mask):
    c = pl.program_id(0)            # batch shard (maps to a TensorCore on v7x)
    i = pl.program_id(1)            # tile within the shard
    nsteps = pl.num_programs(1)

    @pl.when(i == 0)
    def _init():
        acc_ref[0] = jnp.float32(0.0)   # sum of relu(pos_d - neg_d - mu)
        acc_ref[1] = jnp.float32(0.0)   # sum of |pos_d - pd| + |neg_d - nd|

    # Upcast in-register (inputs may be bf16); D is whole within the tile.
    a = a_ref[...].astype(jnp.float32)
    p = p_ref[...].astype(jnp.float32)
    n = n_ref[...].astype(jnp.float32)
    d = d_ref[...]                      # (TB, 2) float32: [:,0]=pd, [:,1]=nd
    pd = d[:, 0:1]
    nd = d[:, 1:2]

    dp = a - p
    dn = a - n
    pos_d = jnp.sqrt(jnp.sum(dp * dp, axis=1, keepdims=True))   # (TB, 1)
    neg_d = jnp.sqrt(jnp.sum(dn * dn, axis=1, keepdims=True))   # (TB, 1)

    triplet_terms = jnp.maximum(pos_d - neg_d - (pd - nd), 0.0)
    approx_terms = jnp.abs(pos_d - pd) + jnp.abs(neg_d - nd)

    if not need_mask:
        # Static fast path: the grid covers the batch exactly.
        acc_ref[0] += jnp.sum(triplet_terms)
        acc_ref[1] += jnp.sum(approx_terms)
    else:
        start = (c * steps_per_shard + i) * tile_b   # logical first row of tile

        @pl.when(start + tile_b <= batch)
        def _full_tile():                # tile entirely inside the batch
            acc_ref[0] += jnp.sum(triplet_terms)
            acc_ref[1] += jnp.sum(approx_terms)

        @pl.when(start + tile_b > batch)
        def _ragged_tile():              # tile straddles / exceeds the batch
            row = jax.lax.broadcasted_iota(jnp.int32, (tile_b, 1), 0) + start
            valid = row < batch
            # jnp.where is a select: NaN/inf from padded garbage rows cannot
            # leak (do NOT replace with arithmetic masking).
            acc_ref[0] += jnp.sum(jnp.where(valid, triplet_terms, 0.0))
            acc_ref[1] += jnp.sum(jnp.where(valid, approx_terms, 0.0))

    @pl.when(i == nsteps - 1)
    def _finalize():
        # Raw per-shard partial sums, written lane-dense; combined + scaled
        # in the wrapper.
        ones = jnp.ones((1, 1, 128), jnp.float32)
        out_ref[...] = jnp.concatenate(
            [acc_ref[0] * ones, acc_ref[1] * ones], axis=1)


def _choose_tile_b(batch, d, itemsize, num_shards):
    # Sublane-packing alignment: 8 rows (f32), 16 (bf16), 32 (int8).
    rnd = max(8, 32 // max(1, itemsize))
    # Byte-based cap: ~2 MiB per input tile (measured knee of the HBM
    # roofline for streaming kernels).  No hard row cap.
    per_input_bytes = 2 * 1024 * 1024
    tb = max(rnd, (per_input_bytes // (d * itemsize)) // rnd * rnd)
    b_pad = ((batch + rnd - 1) // rnd) * rnd
    # Keep at least `num_shards` tiles so both v7x TensorCores get work.
    shard_rows = -(-b_pad // num_shards)
    shard_rows = max(rnd, -(-shard_rows // rnd) * rnd)
    return min(tb, b_pad, shard_rows)


def criterion(anchor, positive, negative, positive_distance, negative_distance,
              alpha=0.1):
    """Returns (loss, triplet_loss, alpha * approximation_loss)."""
    B, D = anchor.shape

    # Distances are tiny; fuse them into one (B, 2) f32 array -> ONE small
    # DMA per grid step instead of two lane-width-1 DMAs.
    dists = jnp.stack(
        [positive_distance.astype(jnp.float32).reshape(B),
         negative_distance.astype(jnp.float32).reshape(B)], axis=1)   # (B, 2)

    itemsize = jnp.dtype(anchor.dtype).itemsize
    P = 2                                    # batch shards -> v7x TensorCores
    tb = _choose_tile_b(B, D, itemsize, P)
    n_blocks = pl.cdiv(B, tb)
    spc = pl.cdiv(n_blocks, P)               # tiles per shard
    need_mask = (P * spc * tb != B)          # static: exact coverage?

    def row_map(c, i):
        # Clamp duplicated tail tiles in-bounds; their rows are masked out.
        return (jnp.minimum(c * spc + i, n_blocks - 1), 0)

    emb_spec = pl.BlockSpec((tb, D), row_map)
    dist_spec = pl.BlockSpec((tb, 2), row_map)
    out_spec = pl.BlockSpec((1, 2, 128), lambda c, i: (c, 0, 0))

    tile_bytes = tb * D * itemsize
    # 3 embedding inputs x 2 pipeline buffers ~= 6 tiles + headroom; stay
    # well under v7x's 64 MiB per-TC physical VMEM.
    vmem_limit = int(min(60 * 1024 * 1024,
                         max(32 * 1024 * 1024, 8 * tile_bytes)))

    cost = pl.CostEstimate(
        flops=10 * B * D,
        transcendentals=2 * B,
        bytes_accessed=3 * B * D * itemsize + B * 2 * 4 + P * 2 * 128 * 4,
    )

    kernel = functools.partial(
        _criterion_kernel, batch=B, tile_b=tb, steps_per_shard=spc,
        need_mask=need_mask)

    partial = pl.pallas_call(
        kernel,
        out_shape=jax.ShapeDtypeStruct((P, 2, 128), jnp.float32),
        grid=(P, spc),
        in_specs=[emb_spec, emb_spec, emb_spec, dist_spec],
        out_specs=out_spec,
        scratch_shapes=[pltpu.SMEM((2,), jnp.float32)],
        compiler_params=pltpu.CompilerParams(
            dimension_semantics=("parallel", "arbitrary"),
            vmem_limit_bytes=vmem_limit),
        cost_estimate=cost,
    )(anchor, positive, negative, dists)     # embeddings in native dtype

    inv_b = jnp.float32(1.0 / B)
    triplet = jnp.sum(partial[:, 0, 0]) * inv_b
    alpha_approx = jnp.sum(partial[:, 1, 0]) * (jnp.float32(alpha) * inv_b)
    loss = triplet + alpha_approx
    return loss, triplet, alpha_approx


def _criterion_ref(anchor, positive, negative, pd, nd, alpha=0.1):
    a = anchor.astype(jnp.float32)
    p = positive.astype(jnp.float32)
    n = negative.astype(jnp.float32)
    pos_d = jnp.linalg.norm(a - p, axis=1)
    neg_d = jnp.linalg.norm(a - n, axis=1)
    mu = pd - nd
    triplet = jnp.mean(jnp.maximum(pos_d - neg_d - mu, 0.0))
    approx = jnp.mean(jnp.abs(pos_d - pd)) + jnp.mean(jnp.abs(neg_d - nd))
    return triplet + alpha * approx, triplet, alpha * approx


if __name__ == "__main__":
    def make_inputs(B, D, dtype):
        k1, k2, k3, k4, k5 = jax.random.split(jax.random.PRNGKey(0), 5)
        anchor = jax.random.normal(k1, (B, D), dtype=jnp.float32).astype(dtype)
        positive = jax.random.normal(k2, (B, D), dtype=jnp.float32).astype(dtype)
        negative = jax.random.normal(k3, (B, D), dtype=jnp.float32).astype(dtype)
        pd = jax.random.uniform(k4, (B,), dtype=jnp.float32) * 2.0
        nd = jax.random.uniform(k5, (B,), dtype=jnp.float32) * 4.0
        return anchor, positive, negative, pd, nd

    # Case 1: small f32, batch a multiple of 8 (one shard masked-out).
    a, p, n, pd, nd = make_inputs(8, 32, jnp.float32)
    got = criterion(a, p, n, pd, nd)
    jax.block_until_ready(got)
    ref = _criterion_ref(a, p, n, pd, nd)
    for g, w in zip(got, ref):
        assert jnp.allclose(g, w, rtol=1e-5, atol=1e-5), (g, w)

    # Case 2: batch NOT a multiple of the tile -> exercises ragged masking.
    a, p, n, pd, nd = make_inputs(13, 32, jnp.float32)
    got = criterion(a, p, n, pd, nd)
    jax.block_until_ready(got)
    ref = _criterion_ref(a, p, n, pd, nd)
    for g, w in zip(got, ref):
        assert jnp.allclose(g, w, rtol=1e-5, atol=1e-5), (g, w)

    # Case 3: exact coverage across both shards -> static no-mask fast path.
    a, p, n, pd, nd = make_inputs(32, 64, jnp.float32)
    got = criterion(a, p, n, pd, nd)
    jax.block_until_ready(got)
    ref = _criterion_ref(a, p, n, pd, nd)
    for g, w in zip(got, ref):
        assert jnp.allclose(g, w, rtol=1e-5, atol=1e-5), (g, w)

    # Case 4: bf16 embeddings streamed in native dtype (no wrapper upcast).
    a, p, n, pd, nd = make_inputs(16, 64, jnp.bfloat16)
    got = criterion(a, p, n, pd, nd)
    jax.block_until_ready(got)
    ref = _criterion_ref(a, p, n, pd, nd)
    for g, w in zip(got, ref):
        assert jnp.allclose(g, w, rtol=2e-2, atol=2e-2), (g, w)

    print("KERNEL_OK")
</pallas_src>

<mosaic_0001>
module attributes {stable_mosaic.version = 11 : i64} {
  func.func @_criterion_kernel(%arg0: i32, %arg1: i32, %arg2: memref<8x32xf32, #tpu.memory_space<vmem>>, %arg3: memref<8x32xf32, #tpu.memory_space<vmem>>, %arg4: memref<8x32xf32, #tpu.memory_space<vmem>>, %arg5: memref<8x2xf32, #tpu.memory_space<vmem>>, %arg6: memref<1x2x128xf32, #tpu.memory_space<vmem>>, %arg7: memref<2xf32, #tpu.memory_space<smem>>) attributes {dimension_semantics = [#tpu.dimension_semantics<parallel>, #tpu.dimension_semantics<arbitrary>], iteration_bounds = array<i64: 2, 1>, scalar_prefetch = 0 : i64, scratch_operands = 1 : i64, tpu.core_type = #tpu.core_type<tc>, window_params = [{transform_indices = @transform_0, window_bounds = array<i64: 8, 32>}, {transform_indices = @transform_1, window_bounds = array<i64: 8, 32>}, {transform_indices = @transform_2, window_bounds = array<i64: 8, 32>}, {transform_indices = @transform_3, window_bounds = array<i64: 8, 2>}, {transform_indices = @transform_4, window_bounds = array<i64: 1, 2, 128>}]} {
    %c0_i32 = arith.constant 0 : i32
    %0 = arith.cmpi eq, %arg1, %c0_i32 : i32
    %1 = arith.extui %0 : i1 to i32
    %c0_i32_0 = arith.constant 0 : i32
    %2 = arith.cmpi ne, %1, %c0_i32_0 : i32
    scf.if %2 {
      %cst_18 = arith.constant 0.000000e+00 : f32
      %c0_19 = arith.constant 0 : index
      %43 = memref.load %arg7[%c0_19] : memref<2xf32, #tpu.memory_space<smem>>
      memref.store %cst_18, %arg7[%c0_19] : memref<2xf32, #tpu.memory_space<smem>>
      %cst_20 = arith.constant 0.000000e+00 : f32
      %c1 = arith.constant 1 : index
      %44 = memref.load %arg7[%c1] : memref<2xf32, #tpu.memory_space<smem>>
      memref.store %cst_20, %arg7[%c1] : memref<2xf32, #tpu.memory_space<smem>>
    } else {
    }
    %c0 = arith.constant 0 : index
    %c0_1 = arith.constant 0 : index
    %3 = vector.load %arg2[%c0, %c0_1] : memref<8x32xf32, #tpu.memory_space<vmem>>, vector<8x32xf32>
    %c0_2 = arith.constant 0 : index
    %c0_3 = arith.constant 0 : index
    %4 = vector.load %arg3[%c0_2, %c0_3] : memref<8x32xf32, #tpu.memory_space<vmem>>, vector<8x32xf32>
    %c0_4 = arith.constant 0 : index
    %c0_5 = arith.constant 0 : index
    %5 = vector.load %arg4[%c0_4, %c0_5] : memref<8x32xf32, #tpu.memory_space<vmem>>, vector<8x32xf32>
    %c0_6 = arith.constant 0 : index
    %c0_7 = arith.constant 0 : index
    %6 = vector.load %arg5[%c0_6, %c0_7] : memref<8x2xf32, #tpu.memory_space<vmem>>, vector<8x2xf32>
    %7 = vector.extract_strided_slice %6 {offsets = [0, 0], sizes = [8, 1], strides = [1, 1]} : vector<8x2xf32> to vector<8x1xf32>
    %8 = vector.extract_strided_slice %6 {offsets = [0, 1], sizes = [8, 1], strides = [1, 1]} : vector<8x2xf32> to vector<8x1xf32>
    %9 = arith.subf %3, %4 : vector<8x32xf32>
    %10 = arith.subf %3, %5 : vector<8x32xf32>
    %11 = arith.mulf %9, %9 : vector<8x32xf32>
    %cst = arith.constant dense<0.000000e+00> : vector<8xf32>
    %12 = vector.multi_reduction <add>, %11, %cst [1] : vector<8x32xf32> to vector<8xf32>
    %13 = vector.shape_cast %12 : vector<8xf32> to vector<8x1xf32>
    %14 = math.sqrt %13 : vector<8x1xf32>
    %15 = arith.mulf %10, %10 : vector<8x32xf32>
    %cst_8 = arith.constant dense<0.000000e+00> : vector<8xf32>
    %16 = vector.multi_reduction <add>, %15, %cst_8 [1] : vector<8x32xf32> to vector<8xf32>
    %17 = vector.shape_cast %16 : vector<8xf32> to vector<8x1xf32>
    %18 = math.sqrt %17 : vector<8x1xf32>
    %19 = arith.subf %14, %18 : vector<8x1xf32>
    %20 = arith.subf %7, %8 : vector<8x1xf32>
    %21 = arith.subf %19, %20 : vector<8x1xf32>
    %cst_9 = arith.constant 0.000000e+00 : f32
    %22 = vector.broadcast %cst_9 : f32 to vector<8x1xf32>
    %23 = arith.maximumf %21, %22 : vector<8x1xf32>
    %24 = arith.subf %14, %7 : vector<8x1xf32>
    %25 = math.absf %24 : vector<8x1xf32>
    %26 = arith.subf %18, %8 : vector<8x1xf32>
    %27 = math.absf %26 : vector<8x1xf32>
    %28 = arith.addf %25, %27 : vector<8x1xf32>
    %c1_i32 = arith.constant 1 : i32
    %29 = arith.muli %arg0, %c1_i32 : i32
    %30 = arith.addi %29, %arg1 : i32
    %c8_i32 = arith.constant 8 : i32
    %31 = arith.muli %30, %c8_i32 : i32
    %c8_i32_10 = arith.constant 8 : i32
    %32 = arith.addi %31, %c8_i32_10 : i32
    %c8_i32_11 = arith.constant 8 : i32
    %33 = arith.cmpi sle, %32, %c8_i32_11 : i32
    %34 = arith.extui %33 : i1 to i32
    %c0_i32_12 = arith.constant 0 : i32
    %35 = arith.cmpi ne, %34, %c0_i32_12 : i32
    scf.if %35 {
      %c0_18 = arith.constant 0 : index
      %43 = memref.load %arg7[%c0_18] : memref<2xf32, #tpu.memory_space<smem>>
      %44 = vector.shape_cast %23 : vector<8x1xf32> to vector<1x8x1xf32>
      %cst_19 = arith.constant dense<0.000000e+00> : vector<1xf32>
      %45 = vector.multi_reduction <add>, %44, %cst_19 [1, 2] : vector<1x8x1xf32> to vector<1xf32>
      %46 = vector.shape_cast %45 : vector<1xf32> to vector<1x1x1xf32>
      %47 = vector.extract %46[0, 0, 0] : f32 from vector<1x1x1xf32>
      %48 = arith.addf %43, %47 : f32
      %c0_20 = arith.constant 0 : index
      %49 = memref.load %arg7[%c0_20] : memref<2xf32, #tpu.memory_space<smem>>
      memref.store %48, %arg7[%c0_20] : memref<2xf32, #tpu.memory_space<smem>>
      %c1 = arith.constant 1 : index
      %50 = memref.load %arg7[%c1] : memref<2xf32, #tpu.memory_space<smem>>
      %51 = vector.shape_cast %28 : vector<8x1xf32> to vector<1x8x1xf32>
      %cst_21 = arith.constant dense<0.000000e+00> : vector<1xf32>
      %52 = vector.multi_reduction <add>, %51, %cst_21 [1, 2] : vector<1x8x1xf32> to vector<1xf32>
      %53 = vector.shape_cast %52 : vector<1xf32> to vector<1x1x1xf32>
      %54 = vector.extract %53[0, 0, 0] : f32 from vector<1x1x1xf32>
      %55 = arith.addf %50, %54 : f32
      %c1_22 = arith.constant 1 : index
      %56 = memref.load %arg7[%c1_22] : memref<2xf32, #tpu.memory_space<smem>>
      memref.store %55, %arg7[%c1_22] : memref<2xf32, #tpu.memory_space<smem>>
    } else {
    }
    %c8_i32_13 = arith.constant 8 : i32
    %36 = arith.addi %31, %c8_i32_13 : i32
    %c8_i32_14 = arith.constant 8 : i32
    %37 = arith.cmpi sgt, %36, %c8_i32_14 : i32
    %38 = arith.extui %37 : i1 to i32
    %c0_i32_15 = arith.constant 0 : i32
    %39 = arith.cmpi ne, %38, %c0_i32_15 : i32
    scf.if %39 {
      %43 = tpu.iota {dimensions = array<i32: 0>} : vector<8x1xi32>
      %44 = vector.broadcast %31 : i32 to vector<8x1xi32>
      %45 = arith.addi %43, %44 : vector<8x1xi32>
      %c8_i32_18 = arith.constant 8 : i32
      %46 = vector.broadcast %c8_i32_18 : i32 to vector<8x1xi32>
      %47 = arith.cmpi slt, %45, %46 : vector<8x1xi32>
      %c0_19 = arith.constant 0 : index
      %48 = memref.load %arg7[%c0_19] : memref<2xf32, #tpu.memory_space<smem>>
      %cst_20 = arith.constant 0.000000e+00 : f32
      %49 = vector.broadcast %cst_20 : f32 to vector<8x1xf32>
      %50 = arith.select %47, %23, %49 : vector<8x1xi1>, vector<8x1xf32>
      %51 = vector.shape_cast %50 : vector<8x1xf32> to vector<1x8x1xf32>
      %cst_21 = arith.constant dense<0.000000e+00> : vector<1xf32>
      %52 = vector.multi_reduction <add>, %51, %cst_21 [1, 2] : vector<1x8x1xf32> to vector<1xf32>
      %53 = vector.shape_cast %52 : vector<1xf32> to vector<1x1x1xf32>
      %54 = vector.extract %53[0, 0, 0] : f32 from vector<1x1x1xf32>
      %55 = arith.addf %48, %54 : f32
      %c0_22 = arith.constant 0 : index
      %56 = memref.load %arg7[%c0_22] : memref<2xf32, #tpu.memory_space<smem>>
      memref.store %55, %arg7[%c0_22] : memref<2xf32, #tpu.memory_space<smem>>
      %c1 = arith.constant 1 : index
      %57 = memref.load %arg7[%c1] : memref<2xf32, #tpu.memory_space<smem>>
      %cst_23 = arith.constant 0.000000e+00 : f32
      %58 = vector.broadcast %cst_23 : f32 to vector<8x1xf32>
      %59 = arith.select %47, %28, %58 : vector<8x1xi1>, vector<8x1xf32>
      %60 = vector.shape_cast %59 : vector<8x1xf32> to vector<1x8x1xf32>
      %cst_24 = arith.constant dense<0.000000e+00> : vector<1xf32>
      %61 = vector.multi_reduction <add>, %60, %cst_24 [1, 2] : vector<1x8x1xf32> to vector<1xf32>
      %62 = vector.shape_cast %61 : vector<1xf32> to vector<1x1x1xf32>
      %63 = vector.extract %62[0, 0, 0] : f32 from vector<1x1x1xf32>
      %64 = arith.addf %57, %63 : f32
      %c1_25 = arith.constant 1 : index
      %65 = memref.load %arg7[%c1_25] : memref<2xf32, #tpu.memory_space<smem>>
      memref.store %64, %arg7[%c1_25] : memref<2xf32, #tpu.memory_space<smem>>
    } else {
    }
    %c0_i32_16 = arith.constant 0 : i32
    %40 = arith.cmpi eq, %arg1, %c0_i32_16 : i32
    %41 = arith.extui %40 : i1 to i32
    %c0_i32_17 = arith.constant 0 : i32
    %42 = arith.cmpi ne, %41, %c0_i32_17 : i32
    scf.if %42 {
      %cst_18 = arith.constant 1.000000e+00 : f32
      %43 = vector.broadcast %cst_18 : f32 to vector<1x1x128xf32>
      %c0_19 = arith.constant 0 : index
      %44 = memref.load %arg7[%c0_19] : memref<2xf32, #tpu.memory_space<smem>>
      %45 = vector.broadcast %44 : f32 to vector<1x1x128xf32>
      %46 = arith.mulf %45, %43 : vector<1x1x128xf32>
      %c1 = arith.constant 1 : index
      %47 = memref.load %arg7[%c1] : memref<2xf32, #tpu.memory_space<smem>>
      %48 = vector.broadcast %47 : f32 to vector<1x1x128xf32>
      %49 = arith.mulf %48, %43 : vector<1x1x128xf32>
      %50 = tpu.concatenate %46, %49 in 1 : vector<1x1x128xf32>, vector<1x1x128xf32> -> vector<1x2x128xf32>
      %c0_20 = arith.constant 0 : index
      %c0_21 = arith.constant 0 : index
      %c0_22 = arith.constant 0 : index
      %51 = vector.load %arg6[%c0_20, %c0_21, %c0_22] : memref<1x2x128xf32, #tpu.memory_space<vmem>>, vector<1x2x128xf32>
      tpu.vector_store %arg6[%c0_20, %c0_21, %c0_22], %50 {strides = array<i32>} : memref<1x2x128xf32, #tpu.memory_space<vmem>>, vector<1x2x128xf32>,
    } else {
    }
    return
  }
  func.func @transform_0(%arg0: i32, %arg1: i32) -> (i32, i32) {
    %c1_i32 = arith.constant 1 : i32
    %0 = arith.muli %arg0, %c1_i32 : i32
    %1 = arith.addi %0, %arg1 : i32
    %c0_i32 = arith.constant 0 : i32
    %2 = arith.minsi %1, %c0_i32 : i32
    %c0_i32_0 = arith.constant 0 : i32
    %c0_i32_1 = arith.constant 0 : i32
    return %2, %c0_i32_0 : i32, i32
  }
  func.func @transform_1(%arg0: i32, %arg1: i32) -> (i32, i32) {
    %c1_i32 = arith.constant 1 : i32
    %0 = arith.muli %arg0, %c1_i32 : i32
    %1 = arith.addi %0, %arg1 : i32
    %c0_i32 = arith.constant 0 : i32
    %2 = arith.minsi %1, %c0_i32 : i32
    %c0_i32_0 = arith.constant 0 : i32
    %c0_i32_1 = arith.constant 0 : i32
    return %2, %c0_i32_0 : i32, i32
  }
  func.func @transform_2(%arg0: i32, %arg1: i32) -> (i32, i32) {
    %c1_i32 = arith.constant 1 : i32
    %0 = arith.muli %arg0, %c1_i32 : i32
    %1 = arith.addi %0, %arg1 : i32
    %c0_i32 = arith.constant 0 : i32
    %2 = arith.minsi %1, %c0_i32 : i32
    %c0_i32_0 = arith.constant 0 : i32
    %c0_i32_1 = arith.constant 0 : i32
    return %2, %c0_i32_0 : i32, i32
  }
  func.func @transform_3(%arg0: i32, %arg1: i32) -> (i32, i32) {
    %c1_i32 = arith.constant 1 : i32
    %0 = arith.muli %arg0, %c1_i32 : i32
    %1 = arith.addi %0, %arg1 : i32
    %c0_i32 = arith.constant 0 : i32
    %2 = arith.minsi %1, %c0_i32 : i32
    %c0_i32_0 = arith.constant 0 : i32
    %c0_i32_1 = arith.constant 0 : i32
    return %2, %c0_i32_0 : i32, i32
  }
  func.func @transform_4(%arg0: i32, %arg1: i32) -> (i32, i32, i32) {
    %c0_i32 = arith.constant 0 : i32
    %c0_i32_0 = arith.constant 0 : i32
    %c0_i32_1 = arith.constant 0 : i32
    return %arg0, %c0_i32, %c0_i32_0 : i32, i32, i32
  }
}

</mosaic_0001>

<bundles_post_ra>
// kernel: tpu_custom_call.1
= control target key start
LH: loop header
LB: loop body
LE: loop exit
PB: predicated region body
PF: predicated region fallthrough
CT: control target
= control target key end

     0   :  { %9 = vsyncpa [#allocation4], 0  ;;  %s1187_s0 = inlined_call_operand.vmem [shape: f32[8,32], index: 0, kind: input, shape index: {}]   ;;  %s1188_s1 = inlined_call_operand.hbm [shape: f32[8,32], index: 1, kind: input, shape index: {}]   ;;  %s1189_s2 = inlined_call_operand.hbm [shape: f32[8,32], index: 2, kind: input, shape index: {}]   ;;  %s1190_s3 = inlined_call_operand.vmem [shape: f32[8,2], index: 3, kind: input, shape index: {}]   ;;  %s1191_s4 = inlined_call_operand.hbm [shape: f32[2,2,128], index: 4, kind: output, shape index: {}]  }
   0x1   :  { %11 = vsyncpa [#allocation4 + $0x1], 0 }
   0x2   :  { %12 = vsyncpa [#allocation7], 0 }
   0x3   :  { %14 = vsyncpa [#allocation7 + $0x1], 0 }
   0x4   :  { %15 = vsyncpa [#allocation5], 0 }
   0x5   :  { %17 = vsyncpa [#allocation5 + $0x1], 0  ;;  %s969_s15 = smov 0   ;;  %s971_s16 = smov 0  }
   0x6   :  { %s973_s17 = smov 0   ;;  %s975_s18 = smov 0  }
   0x7   :  { %s977_s19 = smov 0   ;;  %s979_s20 = smov 0  }
   0x8   :  { %s981_s21 = smov 0   ;;  %s983_s22 = smov 0  }
   0x9 LB: > { %s641_s23 = sadd.s32 4294967295, %s937_s22   ;;  %s642_s24 = sadd.s32 4294967294, %s937_s22   ;;  %s937_s22 = sphi %s983_s22, %s23_s22   ;;  %s933_s21 = sphi %s981_s21, %s1212_s21   ;;  %s929_s20 = sphi %s979_s20, %s1211_s20   ;;  %s925_s19 = sphi %s977_s19, %s1177_s19   ;;  %s921_s18 = sphi %s975_s18, %s1210_s18   ;;  %s917_s17 = sphi %s973_s17, %s1209_s17   ;;  %s913_s16 = sphi %s971_s16, %s1208_s16   ;;  %s909_s15 = sphi %s969_s15, %s1207_s15  }
   0xa   : > { %s35_s25 = sadd.s32 1, %s933_s21  ;;  %p906_p1 = scmp.ne.s32.totalorder %s925_s19, 0 }
   0xb   : > { %p37_p0 = scmp.ge.s32.totalorder %s35_s25, 2  ;;  %p88_p2 = scmp.eq.s32.totalorder %s937_s22, 0 }
   0xc   : > { %p93_p3 = scmp.ne.s32.totalorder %s925_s19, %s921_s18  ;;  %p94_p5 = scmp.eq.s32.totalorder %s641_s23, 0 }
   0xd   : > { %s1214_s25 = smov (%p37_p0, %s35_s25), 0  ;;  %p1015_p4 = por %p906_p1, %p88_p2 }
   0xe   : > { %p1019_p6 = por %p94_p5, %p93_p3  ;;  %s167_s28 = ssub.s32 %s933_s21, %s1214_s25 }
   0xf   : > { %p168_p7 = scmp.eq.s32.totalorder %s167_s28, 0  ;;  %s170_s29 = sadd.s32 1, %s917_s17 }
  0x10   : > { %s1195_s27 = scalar_select %p1019_p6, 1, 0 }
  0x11   : > { %s1027_s30 = scalar_select %p168_p7, %s917_s17, %s170_s29  }
  0x12   : > { %p180_p8 = scmp.ne.s32.totalorder %s917_s17, %s913_s16  ;;  %p181_p9 = scmp.eq.s32.totalorder %s641_s23, 1 }
  0x13   : > { %p186_p10 = scmp.ne.s32.totalorder %s913_s16, %s909_s15  ;;  %p187_p11 = scmp.eq.s32.totalorder %s642_s24, 1 }
  0x14   : > { %p1033_p12 = por %p181_p9, %p180_p8  ;;  %p696_p1 = scmp.lt.s32.totalorder %s937_s22, 2 }
  0x15   : > { %p1038_p0 = por %p187_p11, %p186_p10  ;;  %s939_s7 = smov [#allocation3]  }
  0x16   : > { %s1196_s5 = scalar_select %p1033_p12, 1, 0 }
  0x17   : > { %s1197_s6 = scalar_select %p1038_p0, 1, 0 }
  0x18   : > { %s234_s8 = sshll.u32 %s939_s7, 4  ;;  %p1045_p2 = pnand %p696_p1, %p1015_p4  ;;  %s235_s8 = int_to_ptr.vmem [resolvable:$true] %s234_s8 }
  0x19   : > { %s776_s12 = scalar_lea.hbm %s1188_s1, 128 }
  0x1a   : > { %p777_p7 = scmp.ne.s32.totalorder %s1188_s1, %s776_s12  ;;  %p778_p8 = pneg %p1045_p2 }
  0x1b   : > { %p783_p10 = scmp.lt.s32.totalorder %s776_s12, %s776_s12 }
  0x1c   : > { %p779_p4 = pnand %p778_p8, %p777_p7 }
  0x1e   : > { %p780_p9 = pneg %p779_p4 }
  0x20   : > { %p785_p11 = pnand %p783_p10, %p780_p9 }
  0x22   : > { %788 = shalt.err (!%p785_p11)
}
  0x23   : > { %s789_s18 = scalar_lea.vmem %s235_s8, 128  ;;  %s796_s23 = scalar_lea.vmem %s235_s8, 256 }
  0x24   : > { %p790_p1 = scmp.ne.s32.totalorder %s235_s8, %s789_s18  ;;  %p797_p5 = scmp.lt.s32.totalorder %s235_s8, %s235_s8 }
  0x25   : > { %p798_p0 = scmp.lt.s32.totalorder %s796_s23, %s789_s18 }
  0x26   : > { %p792_p13 = pnand %p790_p1, %p778_p8 }
  0x27   : > { %p799_p12 = por %p798_p0, %p797_p5 }
  0x28   : > { %p793_p3 = pneg %p792_p13 }
  0x2a   : > { %p800_p6 = pnand %p799_p12, %p793_p3 }
  0x2c   : > { %803 = shalt.err (!%p800_p6)
}
  0x2d   : > { %688 = dma.hbm_to_vmem [thread:$0]  (!%p1045_p2), %s1188_s1, 128, %s235_s8, [#allocation4]  }
  0x2e   : > { %p1199_p7 = scmp.lt.s32.totalorder %s937_s22, 3  ;;  %p1200_p4 = scmp.ge.s32.totalorder %s937_s22, 1 }
  0x2f   : > { %s940_s29 = smov [#allocation6]   ;;  %s804_s12 = scalar_lea.hbm %s1189_s2, 128 }
  0x30   : > { %p1074_p9 = pnand %p1200_p4, %p1199_p7  ;;  %s255_s7 = sshll.u32 %s940_s29, 4  ;;  %s256_s7 = int_to_ptr.vmem [resolvable:$true] %s255_s7 }
  0x31   : > { %p805_p6 = scmp.ne.s32.totalorder %s1189_s2, %s804_s12  ;;  %p811_p0 = scmp.lt.s32.totalorder %s804_s12, %s804_s12 }
  0x32   : > { %s1201_s28 = scalar_select %p1074_p9, 1, 0 }
  0x33   : > { %p807_p12 = pnand %p805_p6, %p778_p8 }
  0x35   : > { %p808_p13 = pneg %p807_p12 }
  0x37   : > { %p813_p3 = pnand %p811_p0, %p808_p13 }
  0x39   : > { %816 = shalt.err (!%p813_p3)
}
  0x3a   : > { %s817_s8 = scalar_lea.vmem %s256_s7, 128  ;;  %s824_s18 = scalar_lea.vmem %s256_s7, 256 }
  0x3b   : > { %p818_p5 = scmp.ne.s32.totalorder %s256_s7, %s817_s8  ;;  %p825_p1 = scmp.lt.s32.totalorder %s256_s7, %s256_s7 }
  0x3c   : > { %p826_p7 = scmp.lt.s32.totalorder %s824_s18, %s817_s8 }
  0x3d   : > { %p820_p10 = pnand %p818_p5, %p778_p8 }
  0x3e   : > { %p827_p4 = por %p826_p7, %p825_p1 }
  0x3f   : > { %p821_p11 = pneg %p820_p10 }
  0x41   : > { %p828_p9 = pnand %p827_p4, %p821_p11 }
  0x43   : > { %831 = shalt.err (!%p828_p9)
}
  0x44   : > { %691 = dma.hbm_to_vmem [thread:$0]  (!%p1045_p2), %s1189_s2, 128, %s256_s7, [#allocation7]  }
  0x45   : > { %p1202_p6 = scmp.ne.s32.totalorder %s1201_s28, 0 }
  0x46   : > { %s279_s26 = sand.u32 (!%p1202_p6), 1, %s925_s19   ;;  %p1203_p8 = scmp.ne.s32.totalorder (!%p1202_p6), %s1195_s27, 0 }
  0x47   : > { %277 = sbr.rel (%p1202_p6) target bundleno = 826 (0x33a), region = 36  ;;  %s650_s29 = sshll.u32 (!%p1202_p6), %s279_s26, 3 }
  0x48   : > { %s280_s10 = scalar_lea.sflag (!%p1202_p6), [#allocation4], %s279_s26  ;;  %s283_s11 = scalar_lea.vmem (!%p1202_p6), [#allocation3], %s650_s29 }
  0x4c   : > { %895 = dma.done.wait (%p1203_p8), %s280_s10, 128  }
  0x4d   : > { %897 = vsyncadd (%p1203_p8), %s280_s10, 4294967168  ;;  %s289_s9 = scalar_lea.sflag [#allocation7], %s279_s26  ;;  %s292_s12 = scalar_lea.vmem [#allocation6], %s650_s29 }
  0x4e   : > { %899 = dma.done.wait (%p1203_p8), %s289_s9, 128  }
  0x4f   : > { %901 = vsyncadd (%p1203_p8), %s289_s9, 4294967168  ;;  %p337_p2 = scmp.lt.s32.totalorder %s929_s20, 0  ;;  %s941_s28 = smov 0.0   ;;  %v372_v0 = vld [vmem:[%s292_s12] sm:$0xff]  ;;  %v371_v1 = vld [vmem:[%s283_s11] sm:$0xff]  ;;  %vm377_vm0 = vcmask 261120  }
  0x50   : > { %367 = sst [smem:[#allocation2]] %s941_s28  ;;  %s942_s26 = smov 127  }
  0x51   : > { %369 = sst [smem:[#allocation2 + $0x1]] %s941_s28  ;;  %s333_s29 = sand.u32 1, %s913_s16  }
  0x52   : > { %s338_s7 = scalar_select %p337_p2, %s929_s20, 0 }
  0x53   : > { %s1118_s10 = sshll.u32 %s333_s29, 1  ;;  %s661_s11 = sshll.u32 %s929_s20, 3 }
  0x54   : > { %s1216_s7 = smov (!%p337_p2, %s338_s7), 0  ;;  %s1123_s9 = sadd.s32 8, %s661_s11 }
  0x55   : > { %s656_s13 = sshll.u32 %s1216_s7, 3  ;;  %s335_s12 = scalar_lea.vmem [#allocation8], %s1118_s10 }
  0x56   : > { %s342_s18 = scalar_lea.vmem %s1187_s0, %s656_s13  ;;  %s358_s27 = scalar_lea.vmem %s1190_s3, %s656_s13 }
  0x57   : > { %v370_v2 = vld [vmem:[%s342_s18] sm:$0xff]  ;;  %p662_p9 = scmp.gt.s32.totalorder %s1123_s9, 8 }
  0x58   : > { %v373_v3 = vld [vmem:[%s358_s27] sm:$0xff]  ;;  %v375_v4 = vsub.f32 %v370_v2, %v372_v0  ;;  %v374_v5 = vsub.f32 %v370_v2, %v371_v1  ;;  %s423_s28 = sld [smem:[#allocation2]] (!%p662_p9) }
  0x59   : > { %401 = vrot.lane.b32.xlu1 %v373_v3, %s942_s26  ;;  %s663_s7 = sld [smem:[#allocation2 + $0x1]] (!%p662_p9) }
  0x5a   : > { %v388_v6 = vmul.f32 %v375_v4, %v375_v4  ;;  %v376_v7 = vmul.f32 %v374_v5, %v374_v5 }
  0x5c   : > { %v389_v8 = vsel %vm377_vm0, %v388_v6, 0.0  ;;  %v378_v9 = vsel %vm377_vm0, %v376_v7, 0.0 }
  0x5d   : > { %390 = vadd.xlane.f32.xlu0 %v389_v8 }
  0x61   : > { %379 = vadd.xlane.f32.xlu0 %v378_v9 }
  0xcb   : > { %v402_v18 = vpop.permute.xlu1 %401 }
  0xcc   : > { %v404_v23 = vsub.f32 %v373_v3, %v402_v18 }
  0xe6   : > { %v391_v10 = vpop.xlane.xlu0 %390 }
  0xe7   : > { %772 = vrsqrt.f32 %v391_v10  ;;  %vm394_vm1 = vcmp.eq.f32.partialorder %v391_v10, inf  ;;  %v397_v14 = vand.u32 2147483648, %v391_v10  ;;  %vm396_vm2 = vcmp.eq.f32.partialorder %v391_v10, 0.0 }
  0xea   : > { %v380_v11 = vpop.xlane.xlu0 %379 }
  0xeb   : > { %774 = vrsqrt.f32 %v380_v11  ;;  %vm383_vm3 = vcmp.eq.f32.partialorder %v380_v11, inf  ;;  %v386_v17 = vand.u32 2147483648, %v380_v11  ;;  %vm385_vm4 = vcmp.eq.f32.partialorder %v380_v11, 0.0 }
  0xf4   : > { %v773_v12 = vpop.eup %772 }
  0xf5   : > { %v393_v13 = vmul.f32 %v773_v12, %v391_v10 }
  0xf7   : > { %v395_v15 = vsel %vm394_vm1, %v391_v10, %v393_v13 }
  0xf8   : > { %v775_v16 = vpop.eup %774  ;;  %v398_v19 = vsel %vm396_vm2, %v397_v14, %v395_v15 }
  0xf9   : > { %v382_v20 = vmul.f32 %v775_v16, %v380_v11  ;;  %v409_v21 = vsub.f32 %v398_v19, %v373_v3 }
  0xfb   : > { %v384_v22 = vsel %vm383_vm3, %v380_v11, %v382_v20  ;;  %v410_v24 = vand.u32 2147483647, %v409_v21 }
  0xfc   : > { %v387_v25 = vsel %vm385_vm4, %v386_v17, %v384_v22 }
  0xfd   : > { %v399_v26 = vsub.f32 %v387_v25, %v398_v19  ;;  %412 = vrot.lane.b32.xlu1 %v410_v24, %s942_s26  ;;  %v407_v29 = vsub.f32 %v387_v25, %v373_v3 }
  0xff   : > { %v405_v27 = vsub.f32 %v399_v26, %v404_v23  ;;  %v408_v30 = vand.u32 2147483647, %v407_v29 }
 0x101   : > { %v406_v28 = vmax.f32 %v405_v27, 0.0 }
 0x16c   : > { %422 = sbr.rel (%p662_p9) target bundleno = 578 (0x242), region = 52 }
 0x16f   : > { %v413_v31 = vpop.permute.xlu1 %412 }
 0x170   : > { %v415_v32 = vadd.f32 %v413_v31, %v408_v30 }
 0x171   : > { %vm424_vm5 = vcmask 7168  }
 0x172   : > { %v425_v33 = vsel %vm424_vm5, %v406_v28, 0.0  ;;  %v439_v34 = vsel %vm424_vm5, %v415_v32, 0.0 }
 0x173   : > { %426 = vadd.xlane.f32.xlu0 %v425_v33 }
 0x177   : > { %440 = vadd.xlane.f32.xlu0 %v439_v34 }
 0x1fc   : > { %v427_v35 = vpop.xlane.xlu0 %426 }
 0x1fd   : > { %v428_v36 = vrot.slane %v427_v35, 4 }
 0x1ff   : > { %v429_v37 = vadd.f32 %v428_v36, %v427_v35 }
 0x200   : > { %v441_v38 = vpop.xlane.xlu0 %440 }
 0x201   : > { %v430_v39 = vrot.slane %v429_v37, 2  ;;  %v442_v40 = vrot.slane %v441_v38, 4 }
 0x203   : > { %v443_v41 = vadd.f32 %v442_v40, %v441_v38  ;;  %v431_v42 = vadd.f32 %v430_v39, %v429_v37 }
 0x205   : > { %v444_v43 = vrot.slane %v443_v41, 2  ;;  %v432_v44 = vrot.slane %v431_v42, 1 }
 0x207   : > { %v445_v45 = vadd.f32 %v444_v43, %v443_v41  ;;  %v433_v46 = vadd.f32 %v432_v44, %v431_v42 }
 0x209   : > { %671 = vpush %v433_v46  ;;  %v446_v47 = vrot.slane %v445_v45, 1 }
 0x20b   : > { %v447_v48 = vadd.f32 %v446_v47, %v445_v45 }
 0x20d   : > { %673 = vpush %v447_v48 }
 0x23a   : > { %s672_s13 = spop %671 }
 0x23b   : > { %s435_s14 = sadd.f32 %s672_s13, %s423_s28 }
 0x23d   : > { %437 = sst [smem:[#allocation2]] %s435_s14 }
 0x23e   : > { %s674_s8 = spop %673 }
 0x23f   : > { %s449_s18 = sadd.f32 %s674_s8, %s663_s7 }
 0x241   : > { %451 = sst [smem:[#allocation2 + $0x1]] %s449_s18 }
 0x242 PF: > { %p664_p12 = scmp.le.s32.totalorder %s1123_s9, 8 }
 0x243   : > { %s461_s23 = sld [smem:[#allocation2]] (!%p664_p12) }
 0x244   : > { %455 = sbr.rel (%p664_p12) target bundleno = 801 (0x321), region = 56  ;;  %s665_s24 = sld [smem:[#allocation2 + $0x1]] (!%p664_p12) }
 0x249   : > { %v456_v49 = vlaneseq  ;;  %v458_v50 = vstv %s661_s11  ;;  %vm463_vm6 = vcmask 7168  }
 0x24b   : > { %v457_v51 = vshrl.u32 %v456_v49, 7 }
 0x24d   : > { %v459_v52 = vadd.s32 %v458_v50, %v457_v51 }
 0x24f   : > { %vm460_vm7 = vcmp.lt.s32.totalorder %v459_v52, 8 }
 0x250   : > { %v462_v53 = vsel %vm460_vm7, %v406_v28, 0.0  ;;  %v478_v54 = vsel %vm460_vm7, %v415_v32, 0.0 }
 0x251   : > { %v464_v55 = vsel %vm463_vm6, %v462_v53, 0.0  ;;  %v479_v56 = vsel %vm463_vm6, %v478_v54, 0.0 }
 0x252   : > { %465 = vadd.xlane.f32.xlu0 %v464_v55 }
 0x256   : > { %480 = vadd.xlane.f32.xlu0 %v479_v56 }
 0x2db   : > { %v466_v57 = vpop.xlane.xlu0 %465 }
 0x2dc   : > { %v467_v58 = vrot.slane %v466_v57, 4 }
 0x2de   : > { %v468_v59 = vadd.f32 %v467_v58, %v466_v57 }
 0x2df   : > { %v481_v60 = vpop.xlane.xlu0 %480 }
 0x2e0   : > { %v469_v61 = vrot.slane %v468_v59, 2  ;;  %v482_v62 = vrot.slane %v481_v60, 4 }
 0x2e2   : > { %v483_v63 = vadd.f32 %v482_v62, %v481_v60  ;;  %v470_v0 = vadd.f32 %v469_v61, %v468_v59 }
 0x2e4   : > { %v484_v1 = vrot.slane %v483_v63, 2  ;;  %v471_v2 = vrot.slane %v470_v0, 1 }
 0x2e6   : > { %v485_v3 = vadd.f32 %v484_v1, %v483_v63  ;;  %v472_v4 = vadd.f32 %v471_v2, %v470_v0 }
 0x2e8   : > { %675 = vpush %v472_v4  ;;  %v486_v5 = vrot.slane %v485_v3, 1 }
 0x2ea   : > { %v487_v6 = vadd.f32 %v486_v5, %v485_v3 }
 0x2ec   : > { %677 = vpush %v487_v6 }
 0x319   : > { %s676_s27 = spop %675 }
 0x31a   : > { %s474_s26 = sadd.f32 %s676_s27, %s461_s23 }
 0x31c   : > { %476 = sst [smem:[#allocation2]] %s474_s26 }
 0x31d   : > { %s678_s11 = spop %677 }
 0x31e   : > { %s489_s9 = sadd.f32 %s678_s11, %s665_s24 }
 0x320   : > { %491 = sst [smem:[#allocation2 + $0x1]] %s489_s9 }
 0x321 PF: > { %s495_s28 = sld [smem:[#allocation2]]  ;;  %s668_s13 = sshll.u32 %s929_s20, 5  ;;  %vm499_vm8 = vcmask 1040384  }
 0x322   : > { %s666_s7 = sld [smem:[#allocation2 + $0x1]]  ;;  %s516_s14 = sshll.u32 %s335_s12, 4  ;;  %s517_s14 = int_to_ptr.vmem [resolvable:$true] %s516_s14 }
 0x323   : > { %s1137_s23 = scalar_lea.hbm %s1191_s4, %s668_s13  ;;  %s503_s24 = scalar_lea.sflag [#allocation5], %s333_s29 }
 0x324   : > { %s832_s27 = scalar_lea.vmem %s517_s14, 32  ;;  %p1204_p0 = scmp.ne.s32.totalorder %s1196_s5, 0 }
 0x325   : > { %p833_p13 = scmp.ne.s32.totalorder %s517_s14, %s832_s27  ;;  %s943_s20 = smov [#allocation8]  }
 0x326   : > { %s836_s26 = sshll.u32 %s943_s20, 4  ;;  %s837_s26 = int_to_ptr.vmem [resolvable:$false] %s836_s26 }
 0x327   : > { %v496_v7 = vstv %s495_s28  ;;  %p834_p3 = pnand %p833_p13, %p1204_p0  ;;  %s838_s11 = scalar_lea.vmem %s837_s26, 64 }
 0x328   : > { %v498_v8 = vstv %s666_s7  ;;  %p839_p10 = scmp.lt.s32.totalorder %s517_s14, %s837_s26  ;;  %p840_p11 = scmp.lt.s32.totalorder %s838_s11, %s832_s27 }
 0x329   : > { %v500_v9 = vsel %vm499_vm8, %v496_v7, %v498_v8  ;;  %p835_p5 = pneg %p834_p3 }
 0x32a   : > { %501 = vst [vmem:[%s335_s12] sm:$0x3] %v500_v9  ;;  %p841_p1 = por %p840_p11, %p839_p10 }
 0x32c   : > { %p842_p7 = pnand %p841_p1, %p835_p5 }
 0x32e   : > { %845 = shalt.err (!%p842_p7)
}
 0x32f   : > { %s846_s10 = scalar_lea.hbm %s1137_s23, 32  ;;  %s850_s9 = scalar_lea.hbm %s1191_s4, 64 }
 0x330   : > { %p847_p4 = scmp.ne.s32.totalorder %s1137_s23, %s846_s10  ;;  %p851_p2 = scmp.lt.s32.totalorder %s1137_s23, %s1191_s4 }
 0x331   : > { %p852_p9 = scmp.lt.s32.totalorder %s850_s9, %s846_s10 }
 0x332   : > { %p848_p6 = pnand %p847_p4, %p1204_p0 }
 0x333   : > { %p853_p12 = por %p852_p9, %p851_p2 }
 0x334   : > { %p849_p8 = pneg %p848_p6 }
 0x336   : > { %p854_p13 = pnand %p853_p12, %p849_p8 }
 0x338   : > { %857 = shalt.err (!%p854_p13)
}
 0x339   : > { %683 = dma.vmem_to_hbm [thread:$0]  (%p1204_p0), %s517_s14, 32, %s1137_s23, %s503_s24  }
 0x33a PF: > { %s528_s13 = sand.u32 1, %s909_s15   ;;  %p1205_p3 = scmp.ne.s32.totalorder %s1197_s6, 0 }
 0x33b   : > { %p1206_p5 = scmp.ge.s32.totalorder %s937_s22, 2  ;;  %s529_s8 = scalar_lea.sflag [#allocation5], %s528_s13 }
 0x33d   : > { %p693_p10 = pnand %p1206_p5, %p1205_p3 }
 0x33f   : > { %p694_p11 = pneg %p693_p10 }
 0x341   : > { %903 = dma.done.wait (%p694_p11), %s529_s8, 32  }
 0x342   : > { %905 = vsyncadd (%p694_p11), %s529_s8, 4294967264  ;;  %s23_s22 = sadd.s32 1, %s937_s22   ;;  %s1207_s15 = smov %s913_s16 }
 0x343   : > { %p20_p1 = scmp.ge.s32.totalorder %s23_s22, 4   ;;  %s1208_s16 = smov %s917_s17 }
 0x344   : > { %s1209_s17 = smov %s1027_s30  ;;  %s1210_s18 = smov %s925_s19 }
 0x345   : > { %s1177_s19 = smov 0   ;;  %s1211_s20 = smov %s933_s21 }
 0x346   : > { %s1212_s21 = smov %s1214_s25  ;;  %22 = sbr.rel (!%p20_p1) target bundleno = 9 (0x9), region = 122 }
 0x34b   :  { %534 = vsyncpa [#allocation4], 1 }
 0x34c   :  { %536 = vsyncpa [#allocation4 + $0x1], 1 }
 0x34d   :  { %537 = vsyncpa [#allocation7], 1 }
 0x34e   :  { %539 = vsyncpa [#allocation7 + $0x1], 1 }
 0x34f   :  { %540 = vsyncpa [#allocation5], 1 }
 0x350   :  { %542 = vsyncpa [#allocation5 + $0x1], 1 }

</bundles_post_ra>
